<compile_context>
chip_gen: v7x
topology: tpu7x:2x2x1
jax: 0.10.0
libtpu: 0.0.40
codegen_flags: <defaults>
</compile_context>

<pallas_src>
import jax
import jax.numpy as jnp
import numpy as np
from jax.experimental import pallas as pl
from jax.experimental.pallas import tpu as pltpu

LN_EPS = 1e-5  # torch.nn.LayerNorm default


def _round_up(n: int, m: int) -> int:
    return ((n + m - 1) // m) * m


def _maybe_vmem_limit(est_bytes: int):
    """Explicit scoped-VMEM override only when the double-buffered footprint
    could exceed the v5e default (16 MiB); stays under v7x physical 64 MiB."""
    if est_bytes <= 12 * 1024 * 1024:
        return None
    return min(_round_up(int(est_bytes) * 3 // 2, 1 << 20), 56 * 1024 * 1024)


# ----------------------------------------------------------------------------
# Kernel 1: fused Linear(H -> D) + LayerNorm(D)   (the ColBERT projection head)
# ----------------------------------------------------------------------------
def proj_ln_kernel(x_ref, w_ref, b_ref, gamma_ref, beta_ref, o_ref):
    # x_ref : (TM, H) tile of flattened token rows (bf16 or f32)
    # w_ref : (H, D)  projection weight, resident across the grid
    # b_ref, gamma_ref, beta_ref : (1, D) f32
    z = jnp.dot(x_ref[...], w_ref[...], preferred_element_type=jnp.float32)
    z = z + b_ref[...]
    # Two-pass LayerNorm stats in f32: mean first, then var of centered values
    # (avoids catastrophic cancellation at real activation scales).
    mean = jnp.mean(z, axis=-1, keepdims=True)
    zc = z - mean
    var = jnp.mean(zc * zc, axis=-1, keepdims=True)
    y = zc * jax.lax.rsqrt(var + LN_EPS)
    o_ref[...] = (y * gamma_ref[...] + beta_ref[...]).astype(o_ref.dtype)


def colbert_project(x_rows, w, b, gamma, beta, *, tile_m=1024, out_dtype=None):
    """(N, H) -> (N, D) = LayerNorm(x @ w + b) * gamma + beta.

    Ragged grid (pl.cdiv): no host-side pad/slice.  tile_m is a tunable (sweep
    512-2048 on 128 MiB VMEM parts); it is capped so there are >= 2 "parallel"
    grid steps whenever possible (v7x megacore needs a splittable grid).
    """
    N, H = x_rows.shape
    D = w.shape[1]
    out_dtype = out_dtype if out_dtype is not None else x_rows.dtype

    # Sublane-aligned row tile; <= tile_m; >= 2 grid steps once N >= 16.
    tm = _round_up(min(tile_m, max(pl.cdiv(N, 2), 8)), 8)
    grid = (pl.cdiv(N, tm),)

    est = (2 * tm * H * x_rows.dtype.itemsize            # double-buffered input
           + 2 * tm * D * jnp.dtype(out_dtype).itemsize  # double-buffered output
           + H * D * w.dtype.itemsize + 3 * D * 4)        # resident weights
    out = pl.pallas_call(
        proj_ln_kernel,
        out_shape=jax.ShapeDtypeStruct((N, D), out_dtype),
        grid_spec=pltpu.PrefetchScalarGridSpec(
            num_scalar_prefetch=0,
            grid=grid,
            in_specs=[
                pl.BlockSpec((tm, H), lambda i: (i, 0)),
                pl.BlockSpec((H, D), lambda i: (0, 0)),
                pl.BlockSpec((1, D), lambda i: (0, 0)),
                pl.BlockSpec((1, D), lambda i: (0, 0)),
                pl.BlockSpec((1, D), lambda i: (0, 0)),
            ],
            out_specs=pl.BlockSpec((tm, D), lambda i: (i, 0)),
        ),
        compiler_params=pltpu.CompilerParams(
            dimension_semantics=("parallel",),
            vmem_limit_bytes=_maybe_vmem_limit(est),
        ),
    )(x_rows, w, b, gamma, beta)
    return out


# ----------------------------------------------------------------------------
# Kernel 2: cross-encoder scoring head: mean-pool over seq + Linear(H -> 1)
#           pairs axis "parallel", sequence axis is a reduction ("arbitrary")
# ----------------------------------------------------------------------------
def _make_ce_kernel(seq_len: int, ts: int, needs_mask: bool):
    inv_s = 1.0 / seq_len

    def ce_head_kernel(x_ref, w_ref, b_ref, o_ref, acc_ref):
        # x_ref  : (TP, TS, H) pair-hidden block (bf16 or f32)
        # w_ref  : (1, H)      classifier weight row
        # b_ref  : (1,)        scalar bias in SMEM (f32)
        # o_ref  : (TP, 1)     logits
        # acc_ref: (TP, 1)     f32 running sum over the sequence axis
        j = pl.program_id(1)

        @pl.when(j == 0)
        def _():
            acc_ref[...] = jnp.zeros_like(acc_ref)

        x = x_ref[...].astype(jnp.float32)
        if needs_mask:  # trailing seq block overhangs S: zero the garbage reads
            seq = j * ts + jax.lax.broadcasted_iota(jnp.int32, (1, ts, 1), 1)
            x = jnp.where(seq < seq_len, x, 0.0)
        pooled = jnp.sum(x, axis=1)                                  # (TP, H)
        w = w_ref[...].astype(jnp.float32)                           # (1, H)
        acc_ref[...] += jnp.sum(pooled * w, axis=-1, keepdims=True)  # (TP, 1)

        @pl.when(j == pl.num_programs(1) - 1)
        def _():
            # Output traffic is tiny; (TP, 1) masked stores are acceptable here.
            o_ref[...] = (acc_ref[...] * inv_s + b_ref[0]).astype(o_ref.dtype)

    return ce_head_kernel


def cross_encoder_scores(pair_hidden, w_ce_row, b_ce, *, tile_p=32, tile_s=128):
    """(P, S, H) -> (P, 1) logits: mean over S then Linear(H -> 1).

    Every block is a bounded (tp, ts, H) slab (2*tp*ts*H bytes double-buffered
    stays in the few-MiB range even at S=512, H=1024), restoring a real HBM
    pipeline instead of pulling the whole (P, S, H) tensor into VMEM.
    """
    P, S, H = pair_hidden.shape

    if P <= tile_p:
        tp = P                                             # block == full axis
    else:
        tp = _round_up(min(tile_p, pl.cdiv(P, 2)), 8)      # >= 2 parallel steps
    if S <= tile_s:
        ts = S
    else:
        ts = _round_up(min(tile_s, S), 8)
    needs_mask = (S % ts) != 0
    grid = (pl.cdiv(P, tp), pl.cdiv(S, ts))

    est = (2 * tp * ts * H * pair_hidden.dtype.itemsize
           + H * w_ce_row.dtype.itemsize + 4 * tp * 4)
    out = pl.pallas_call(
        _make_ce_kernel(S, ts, needs_mask),
        out_shape=jax.ShapeDtypeStruct((P, 1), jnp.float32),
        grid_spec=pltpu.PrefetchScalarGridSpec(
            num_scalar_prefetch=0,
            grid=grid,
            in_specs=[
                pl.BlockSpec((tp, ts, H), lambda i, j: (i, j, 0)),
                pl.BlockSpec((1, H), lambda i, j: (0, 0)),
                pl.BlockSpec(memory_space=pltpu.MemorySpace.SMEM),
            ],
            out_specs=pl.BlockSpec((tp, 1), lambda i, j: (i, 0)),
            scratch_shapes=[pltpu.VMEM((tp, 1), jnp.float32)],
        ),
        compiler_params=pltpu.CompilerParams(
            dimension_semantics=("parallel", "arbitrary"),
            vmem_limit_bytes=_maybe_vmem_limit(est),
        ),
    )(pair_hidden, w_ce_row, b_ce)
    return out


# ----------------------------------------------------------------------------
# Forward wrapper mirroring HybridPatentReranker.forward
# ----------------------------------------------------------------------------
def hybrid_patent_reranker_forward(queries_h, positives_h, negatives_h,
                                   pairs_h, params, *,
                                   compute_dtype=jnp.bfloat16,
                                   tile_m=1024, tile_p=32, tile_s=128):
    """Returns (colbert_outputs: list of 3 (B,S,128), ce_scores: (P,1,1)).

    compute_dtype=bf16 halves HBM read (and ColBERT write) traffic of both
    memory-bound kernels and runs the MXU at native bf16 rate; LayerNorm and
    all accumulation stay f32.  (Ideally the upstream encoders already emit
    bf16 hidden states so the boundary cast is free.)
    """
    w_proj, b_proj, gamma, beta, w_ce_row, b_ce = params
    w_c = w_proj.astype(compute_dtype)

    # Three independent projection calls -- no host-side concat/pad/slice
    # copies; the re-DMA'd (H, D) weight per call is negligible.
    colbert_outputs = []
    for h in (queries_h, positives_h, negatives_h):
        B, S, _ = h.shape
        rows = h.reshape(B * S, -1).astype(compute_dtype)
        proj = colbert_project(rows, w_c, b_proj, gamma, beta,
                               tile_m=tile_m, out_dtype=compute_dtype)
        colbert_outputs.append(proj.reshape(B, S, -1))

    ce_logits = cross_encoder_scores(pairs_h.astype(compute_dtype),
                                     w_ce_row.astype(compute_dtype), b_ce,
                                     tile_p=tile_p, tile_s=tile_s)
    # torch.stack over per-pair [1, 1] logits -> (P, 1, 1)
    ce_scores = ce_logits.reshape(ce_logits.shape[0], 1, 1)
    return colbert_outputs, ce_scores


# ----------------------------------------------------------------------------
# Pure-JAX reference (for correctness check)
# ----------------------------------------------------------------------------
def reference_forward(queries_h, positives_h, negatives_h, pairs_h, params):
    w_proj, b_proj, gamma, beta, w_ce_row, b_ce = params

    def proj_ln(x):
        z = x @ w_proj + b_proj
        mean = jnp.mean(z, axis=-1, keepdims=True)
        var = jnp.mean((z - mean) ** 2, axis=-1, keepdims=True)
        return ((z - mean) * jax.lax.rsqrt(var + LN_EPS)) * gamma + beta

    colbert_outputs = [proj_ln(h) for h in (queries_h, positives_h, negatives_h)]
    pooled = jnp.mean(pairs_h, axis=1)                         # (P, H)
    ce = jnp.sum(pooled * w_ce_row, axis=-1, keepdims=True) + b_ce[0]
    return colbert_outputs, ce.reshape(pairs_h.shape[0], 1, 1)


if __name__ == "__main__":
    # Small shapes consistent with the module's forward
    B, S, H, D, P = 2, 8, 32, 128, 2

    key = jax.random.PRNGKey(0)
    k = jax.random.split(key, 10)

    # Synthetic encoder outputs (stand-ins for last_hidden_state tensors)
    queries_h = jax.random.normal(k[0], (B, S, H), jnp.float32)
    positives_h = jax.random.normal(k[1], (B, S, H), jnp.float32)
    negatives_h = jax.random.normal(k[2], (B, S, H), jnp.float32)
    pairs_h = jax.random.normal(k[3], (P, S, H), jnp.float32)

    # Deterministic parameter init (colbert_proj, LayerNorm, CE scoring head)
    w_proj = jax.random.normal(k[4], (H, D), jnp.float32) * (1.0 / np.sqrt(H))
    b_proj = jax.random.normal(k[5], (1, D), jnp.float32) * 0.01
    gamma = jnp.ones((1, D), jnp.float32)
    beta = jnp.zeros((1, D), jnp.float32)
    w_ce_row = jax.random.normal(k[6], (1, H), jnp.float32) * (1.0 / np.sqrt(H))
    b_ce = jnp.zeros((1,), jnp.float32)

    params = (w_proj, b_proj, gamma, beta, w_ce_row, b_ce)

    # ---- 1) f32 path: exact kernel-math check against pure-JAX reference ----
    ref_colbert, ref_ce = reference_forward(
        queries_h, positives_h, negatives_h, pairs_h, params)
    colbert_f32, ce_f32 = hybrid_patent_reranker_forward(
        queries_h, positives_h, negatives_h, pairs_h, params,
        compute_dtype=jnp.float32)
    for t in colbert_f32:
        jax.block_until_ready(t)
    jax.block_until_ready(ce_f32)
    for got, ref in zip(colbert_f32, ref_colbert):
        np.testing.assert_allclose(np.asarray(got), np.asarray(ref),
                                   rtol=1e-4, atol=1e-4)
    np.testing.assert_allclose(np.asarray(ce_f32), np.asarray(ref_ce),
                               rtol=1e-4, atol=1e-4)

    # ---- 2) bf16 fast path (production config): apples-to-apples reference
    #         built on bf16-rounded inputs/weights, looser tolerance ----------
    bf = lambda a: a.astype(jnp.bfloat16).astype(jnp.float32)
    params_bfref = (bf(w_proj), b_proj, gamma, beta, bf(w_ce_row), b_ce)
    ref_colbert_bf, ref_ce_bf = reference_forward(
        bf(queries_h), bf(positives_h), bf(negatives_h), bf(pairs_h),
        params_bfref)
    colbert_bf, ce_bf = hybrid_patent_reranker_forward(
        queries_h, positives_h, negatives_h, pairs_h, params,
        compute_dtype=jnp.bfloat16)
    for t in colbert_bf:
        jax.block_until_ready(t)
    jax.block_until_ready(ce_bf)
    for got, ref in zip(colbert_bf, ref_colbert_bf):
        np.testing.assert_allclose(np.asarray(got.astype(jnp.float32)),
                                   np.asarray(ref), rtol=2e-2, atol=2e-2)
    np.testing.assert_allclose(np.asarray(ce_bf), np.asarray(ref_ce_bf),
                               rtol=2e-2, atol=2e-2)

    assert colbert_f32[0].shape == (B, S, D)
    assert ce_f32.shape == (P, 1, 1)
    assert colbert_bf[0].shape == (B, S, D)
    assert ce_bf.shape == (P, 1, 1)
    print("KERNEL_OK")
</pallas_src>

<mosaic_0001>
module attributes {stable_mosaic.version = 11 : i64} {
  func.func @proj_ln_kernel(%arg0: i32, %arg1: memref<8x32xf32, #tpu.memory_space<vmem>>, %arg2: memref<32x128xf32, #tpu.memory_space<vmem>>, %arg3: memref<1x128xf32, #tpu.memory_space<vmem>>, %arg4: memref<1x128xf32, #tpu.memory_space<vmem>>, %arg5: memref<1x128xf32, #tpu.memory_space<vmem>>, %arg6: memref<8x128xf32, #tpu.memory_space<vmem>>) attributes {dimension_semantics = [#tpu.dimension_semantics<parallel>], iteration_bounds = array<i64: 2>, scalar_prefetch = 0 : i64, scratch_operands = 0 : i64, tpu.core_type = #tpu.core_type<tc>, window_params = [{transform_indices = @transform_0, window_bounds = array<i64: 8, 32>}, {pipeline_mode = #tpu.pipeline_mode<synchronous>, transform_indices = @transform_1, window_bounds = array<i64: 32, 128>}, {pipeline_mode = #tpu.pipeline_mode<synchronous>, transform_indices = @transform_2, window_bounds = array<i64: 1, 128>}, {pipeline_mode = #tpu.pipeline_mode<synchronous>, transform_indices = @transform_3, window_bounds = array<i64: 1, 128>}, {pipeline_mode = #tpu.pipeline_mode<synchronous>, transform_indices = @transform_4, window_bounds = array<i64: 1, 128>}, {transform_indices = @transform_5, window_bounds = array<i64: 8, 128>}]} {
    %c0 = arith.constant 0 : index
    %c0_0 = arith.constant 0 : index
    %0 = vector.load %arg1[%c0, %c0_0] : memref<8x32xf32, #tpu.memory_space<vmem>>, vector<8x32xf32>
    %c0_1 = arith.constant 0 : index
    %c0_2 = arith.constant 0 : index
    %1 = vector.load %arg2[%c0_1, %c0_2] : memref<32x128xf32, #tpu.memory_space<vmem>>, vector<32x128xf32>
    %cst = arith.constant dense<0.000000e+00> : vector<8x128xf32>
    %2 = tpu.matmul %0, %1, %cst {dimension_numbers = #tpu.dot_dimension_numbers<[1], [0], [0], [1], [0, 0, 1, 1], [], []>} : vector<8x32xf32>, vector<32x128xf32>, vector<8x128xf32> -> vector<8x128xf32>
    %c0_3 = arith.constant 0 : index
    %c0_4 = arith.constant 0 : index
    %3 = vector.load %arg3[%c0_3, %c0_4] : memref<1x128xf32, #tpu.memory_space<vmem>>, vector<1x128xf32>
    %4 = vector.broadcast %3 : vector<1x128xf32> to vector<8x128xf32>
    %5 = arith.addf %2, %4 : vector<8x128xf32>
    %cst_5 = arith.constant dense<0.000000e+00> : vector<8xf32>
    %6 = vector.multi_reduction <add>, %5, %cst_5 [1] : vector<8x128xf32> to vector<8xf32>
    %7 = vector.shape_cast %6 : vector<8xf32> to vector<8x1xf32>
    %cst_6 = arith.constant 1.280000e+02 : f32
    %8 = vector.broadcast %cst_6 : f32 to vector<8x1xf32>
    %9 = arith.divf %7, %8 : vector<8x1xf32>
    %10 = vector.broadcast %9 : vector<8x1xf32> to vector<8x128xf32>
    %11 = arith.subf %5, %10 : vector<8x128xf32>
    %12 = arith.mulf %11, %11 : vector<8x128xf32>
    %cst_7 = arith.constant dense<0.000000e+00> : vector<8xf32>
    %13 = vector.multi_reduction <add>, %12, %cst_7 [1] : vector<8x128xf32> to vector<8xf32>
    %14 = vector.shape_cast %13 : vector<8xf32> to vector<8x1xf32>
    %cst_8 = arith.constant 1.280000e+02 : f32
    %15 = vector.broadcast %cst_8 : f32 to vector<8x1xf32>
    %16 = arith.divf %14, %15 : vector<8x1xf32>
    %cst_9 = arith.constant 9.99999974E-6 : f32
    %17 = vector.broadcast %cst_9 : f32 to vector<8x1xf32>
    %18 = arith.addf %16, %17 : vector<8x1xf32>
    %19 = math.rsqrt %18 : vector<8x1xf32>
    %20 = vector.broadcast %19 : vector<8x1xf32> to vector<8x128xf32>
    %21 = arith.mulf %11, %20 : vector<8x128xf32>
    %c0_10 = arith.constant 0 : index
    %c0_11 = arith.constant 0 : index
    %22 = vector.load %arg4[%c0_10, %c0_11] : memref<1x128xf32, #tpu.memory_space<vmem>>, vector<1x128xf32>
    %23 = vector.broadcast %22 : vector<1x128xf32> to vector<8x128xf32>
    %24 = arith.mulf %21, %23 : vector<8x128xf32>
    %c0_12 = arith.constant 0 : index
    %c0_13 = arith.constant 0 : index
    %25 = vector.load %arg5[%c0_12, %c0_13] : memref<1x128xf32, #tpu.memory_space<vmem>>, vector<1x128xf32>
    %26 = vector.broadcast %25 : vector<1x128xf32> to vector<8x128xf32>
    %27 = arith.addf %24, %26 : vector<8x128xf32>
    %c0_14 = arith.constant 0 : index
    %c0_15 = arith.constant 0 : index
    %28 = vector.load %arg6[%c0_14, %c0_15] : memref<8x128xf32, #tpu.memory_space<vmem>>, vector<8x128xf32>
    tpu.vector_store %arg6[%c0_14, %c0_15], %27 {strides = array<i32>} : memref<8x128xf32, #tpu.memory_space<vmem>>, vector<8x128xf32>,
    return
  }
  func.func @transform_0(%arg0: i32) -> (i32, i32) {
    %c0_i32 = arith.constant 0 : i32
    %c0_i32_0 = arith.constant 0 : i32
    return %arg0, %c0_i32 : i32, i32
  }
  func.func @transform_1(%arg0: i32) -> (i32, i32) {
    %c0_i32 = arith.constant 0 : i32
    %c0_i32_0 = arith.constant 0 : i32
    %c0_i32_1 = arith.constant 0 : i32
    return %c0_i32, %c0_i32_0 : i32, i32
  }
  func.func @transform_2(%arg0: i32) -> (i32, i32) {
    %c0_i32 = arith.constant 0 : i32
    %c0_i32_0 = arith.constant 0 : i32
    %c0_i32_1 = arith.constant 0 : i32
    return %c0_i32, %c0_i32_0 : i32, i32
  }
  func.func @transform_3(%arg0: i32) -> (i32, i32) {
    %c0_i32 = arith.constant 0 : i32
    %c0_i32_0 = arith.constant 0 : i32
    %c0_i32_1 = arith.constant 0 : i32
    return %c0_i32, %c0_i32_0 : i32, i32
  }
  func.func @transform_4(%arg0: i32) -> (i32, i32) {
    %c0_i32 = arith.constant 0 : i32
    %c0_i32_0 = arith.constant 0 : i32
    %c0_i32_1 = arith.constant 0 : i32
    return %c0_i32, %c0_i32_0 : i32, i32
  }
  func.func @transform_5(%arg0: i32) -> (i32, i32) {
    %c0_i32 = arith.constant 0 : i32
    %c0_i32_0 = arith.constant 0 : i32
    return %arg0, %c0_i32 : i32, i32
  }
}

</mosaic_0001>

<bundles_post_ra>
// kernel: tpu_custom_call.1
= control target key start
LH: loop header
LB: loop body
LE: loop exit
PB: predicated region body
PF: predicated region fallthrough
CT: control target
= control target key end

     0   :  { %10 = vsyncpa [#allocation3], 0  ;;  %s945_s0 = inlined_call_operand.hbm [shape: f32[16,32], index: 0, kind: input, shape index: {}]   ;;  %s946_s1 = inlined_call_operand.hbm [shape: f32[32,128], index: 1, kind: input, shape index: {}]   ;;  %s947_s2 = inlined_call_operand.vmem [shape: f32[1,128], index: 2, kind: input, shape index: {}]   ;;  %s948_s3 = inlined_call_operand.vmem [shape: f32[1,128], index: 3, kind: input, shape index: {}]   ;;  %s949_s4 = inlined_call_operand.vmem [shape: f32[1,128], index: 4, kind: input, shape index: {}]   ;;  %s950_s5 = inlined_call_operand.hbm [shape: f32[16,128], index: 5, kind: output, shape index: {}]  }
   0x1   :  { %12 = vsyncpa [#allocation3 + $0x1], 0 }
   0x2   :  { %13 = vsyncpa [#allocation6], 0 }
   0x3   :  { %14 = vsyncpa [#allocation4], 0 }
   0x4   :  { %16 = vsyncpa [#allocation4 + $0x1], 0  ;;  %s736_s18 = smov 0   ;;  %s738_s19 = smov 0  }
   0x5   :  { %s740_s20 = smov 0   ;;  %s742_s21 = smov 0  }
   0x6 LB: > { %s757_s22 = sadd.s32 4294967295, %s696_s21   ;;  %s464_s23 = sadd.s32 4294967294, %s696_s21   ;;  %s696_s21 = sphi %s742_s21, %s970_s21   ;;  %s692_s20 = sphi %s740_s20, %s969_s20   ;;  %s688_s19 = sphi %s738_s19, %s968_s19   ;;  %s684_s18 = sphi %s736_s18, %s967_s18  }
   0x7   : > { %p42_p0 = scmp.ne.s32.totalorder %s688_s19, %s684_s18  ;;  %p951_p1 = scmp.eq.s32.totalorder %s757_s22, 0 }
   0x8   : > { %p156_p3 = scmp.eq.s32.totalorder %s464_s23, 1  ;;  %p465_p5 = scmp.ge.s32.totalorder %s696_s21, 1 }
   0x9   : > { %p766_p4 = por %p951_p1, %p42_p0  ;;  %p163_p7 = scmp.lt.s32.totalorder %s696_s21, 3 }
   0xa   : > { %p771_p6 = por %p156_p3, %p42_p0  ;;  %s698_s27 = smov [#allocation5]  }
   0xb   : > { %s954_s24 = scalar_select %p766_p4, 1, 0 }
   0xc   : > { %s955_s25 = scalar_select %p771_p6, 1, 0 }
   0xd   : > { %p776_p8 = pnand %p465_p5, %p163_p7  ;;  %s175_s28 = sshll.u32 %s698_s27, 4  ;;  %s780_s28 = int_to_ptr.vmem [resolvable:$true] %s175_s28 }
   0xe   : > { %s792_s30 = sadd.s32 1, %s696_s21   ;;  %s29_s6 = sadd.s32 1, %s692_s20 }
   0xf   : > { %s956_s26 = scalar_select %p776_p8, 1, 0 }
  0x10   : > { %p512_p9 = pneg %p776_p8  ;;  %s26_s7 = ssub.s32 %s696_s21, %s792_s30 }
  0x11   : > { %s568_s10 = scalar_lea.hbm %s946_s1, 512 }
  0x12   : > { %p787_p11 = pnand %p512_p9, %p951_p1  ;;  %p569_p12 = scmp.ne.s32.totalorder %s946_s1, %s568_s10 }
  0x13   : > { %p575_p5 = scmp.lt.u32.totalorder %s568_s10, %s946_s1 }
  0x14   : > { %p570_p13 = pneg %p787_p11 }
  0x16   : > { %p571_p0 = pnand %p570_p13, %p569_p12 }
  0x18   : > { %p572_p3 = pneg %p571_p0 }
  0x1a   : > { %p577_p7 = pnand %p575_p5, %p572_p3 }
  0x1c   : > { %580 = shalt.err (!%p577_p7)
}
  0x1d   : > { %s581_s15 = scalar_lea.vmem %s780_s28, 512  ;;  %p589_p2 = scmp.lt.s32.totalorder %s780_s28, %s780_s28 }
  0x1e   : > { %p582_p9 = scmp.ne.s32.totalorder %s780_s28, %s581_s15  ;;  %p590_p6 = scmp.lt.s32.totalorder %s581_s15, %s581_s15 }
  0x20   : > { %p584_p10 = pnand %p582_p9, %p570_p13  ;;  %p591_p4 = por %p590_p6, %p589_p2 }
  0x22   : > { %p585_p1 = pneg %p584_p10 }
  0x24   : > { %p592_p8 = pnand %p591_p4, %p585_p1 }
  0x26   : > { %595 = shalt.err (!%p592_p8)
}
  0x27   : > { %s699_s16 = smov 128   ;;  %s700_s17 = smov 8  }
  0x28   : > { %515 = dma.hbm_to_vmem [thread:$0]  (!%p787_p11), %s946_s1, 512, %s780_s28, [#allocation6], %s699_s16, %s699_s16, %s700_s17  }
  0x29   : > { %p27_p2 = scmp.eq.s32.totalorder %s26_s7, 0  ;;  %p36_p1 = scmp.ne.s32.totalorder %s692_s20, %s688_s19 }
  0x2a   : > { %p37_p4 = scmp.eq.s32.totalorder %s696_s21, 0  ;;  %p525_p6 = scmp.lt.s32.totalorder %s696_s21, 2 }
  0x2b   : > { %s823_s8 = scalar_select %p27_p2, %s692_s20, %s29_s6  }
  0x2c   : > { %p38_p8 = por %p37_p4, %p36_p1  ;;  %p958_p10 = scmp.eq.s32.totalorder %s757_s22, 1 }
  0x2d   : > { %s198_s10 = sand.u32 1, %s692_s20   ;;  %s469_s11 = sshll.u32 %s696_s21, 7 }
  0x2e   : > { %p827_p12 = por %p958_p10, %p36_p1  ;;  %s468_s12 = sshll.u32 %s198_s10, 3 }
  0x2f   : > { %s836_s14 = scalar_lea.hbm %s945_s0, %s469_s11  ;;  %s202_s28 = scalar_lea.vmem [#allocation2], %s468_s12 }
  0x30   : > { %s209_s6 = sshll.u32 %s202_s28, 4  ;;  %p838_p11 = pnand %p525_p6, %p38_p8  ;;  %s842_s6 = int_to_ptr.vmem [resolvable:$true] %s209_s6 }
  0x31   : > { %s199_s15 = scalar_lea.sflag [#allocation3], %s198_s10  ;;  %s596_s16 = scalar_lea.hbm %s836_s14, 128 }
  0x32   : > { %p597_p13 = scmp.ne.s32.totalorder %s836_s14, %s596_s16  ;;  %p598_p0 = pneg %p838_p11 }
  0x33   : > { %s601_s27 = scalar_lea.hbm %s945_s0, 256  ;;  %p602_p7 = scmp.lt.u32.totalorder %s836_s14, %s945_s0 }
  0x34   : > { %p599_p3 = pnand %p598_p0, %p597_p13  ;;  %p603_p9 = scmp.lt.u32.totalorder %s601_s27, %s596_s16 }
  0x35   : > { %p605_p1 = scmp.lt.u32.totalorder %s596_s16, %s836_s14 }
  0x36   : > { %p600_p5 = pneg %p599_p3  ;;  %p604_p2 = por %p603_p9, %p602_p7 }
  0x38   : > { %p606_p4 = por %p605_p1, %p604_p2 }
  0x3a   : > { %p607_p6 = pnand %p606_p4, %p600_p5 }
  0x3c   : > { %610 = shalt.err (!%p607_p6)
}
  0x3d   : > { %s611_s10 = scalar_lea.vmem %s842_s6, 128  ;;  %s701_s29 = smov [#allocation2]  }
  0x3e   : > { %p612_p8 = scmp.ne.s32.totalorder %s842_s6, %s611_s10  ;;  %s616_s13 = sshll.u32 %s701_s29, 4  ;;  %s617_s13 = int_to_ptr.vmem [resolvable:$false] %s616_s13 }
  0x3f   : > { %s618_s28 = scalar_lea.vmem %s617_s13, 256  ;;  %p619_p3 = scmp.lt.s32.totalorder %s842_s6, %s617_s13 }
  0x40   : > { %p614_p10 = pnand %p612_p8, %p598_p0  ;;  %p620_p7 = scmp.lt.s32.totalorder %s618_s28, %s611_s10 }
  0x42   : > { %p615_p13 = pneg %p614_p10  ;;  %p621_p9 = por %p620_p7, %p619_p3 }
  0x44   : > { %p622_p2 = pnand %p621_p9, %p615_p13 }
  0x46   : > { %625 = shalt.err (!%p622_p2)
}
  0x47   : > { %519 = dma.hbm_to_vmem [thread:$0]  (!%p838_p11), %s836_s14, 128, %s842_s6, %s199_s15  }
  0x48   : > { %p961_p5 = scmp.ne.s32.totalorder %s956_s26, 0 }
  0x49   : > { %s872_s16 = sand.u32 (!%p961_p5), 1, %s688_s19   ;;  %p962_p0 = scmp.ne.s32.totalorder (!%p961_p5), %s954_s24, 0 }
  0x4a   : > { %218 = sbr.rel (%p961_p5) target bundleno = 634 (0x27a), region = 40  ;;  %s471_s17 = sshll.u32 (!%p961_p5), %s872_s16, 3 }
  0x4b   : > { %s221_s23 = scalar_lea.sflag (!%p961_p5), [#allocation3], %s872_s16  ;;  %s224_s27 = scalar_lea.vmem (!%p961_p5), [#allocation2], %s471_s17 }
  0x51   : > { %671 = dma.done.wait (%p962_p0), %s221_s23, 128  }
  0x52   : > { %673 = vsyncadd (%p962_p0), %s221_s23, 4294967168  ;;  %p963_p11 = scmp.eq.s32.totalorder %s757_s22, 0 }
  0x54   : > { %675 = dma.done.wait (%p963_p11), [#allocation6], 512   ;;  %p964_p1 = pmov %p963_p11 }
  0x55   : > { %v702_v0 = vmov 0.0|0.0   ;;  %vm703_vm0 = vmmov 0   ;;  %v704_v1 = vmov 0.0   ;;  %v256_v2 = vld [vmem:[#allocation5] sm:$0xff]  ;;  %v257_v3 = vld [vmem:[#allocation5 + $0x8] sm:$0xff]  ;;  %v258_v4 = vld [vmem:[#allocation5 + $0x10] sm:$0xff] }
  0x56   : > { %677 = vsyncadd (%p964_p1), [#allocation6], 4294966784  ;;  %498 = vmatprep.subr.bf16.mxu0 %v702_v0  ;;  %495 = vmatprep.mubr.msk.f32.mxu0 %vm703_vm0, %v704_v1  ;;  %v499_v5 = vpack.c.bf16 %v257_v3, %v256_v2  ;;  %v259_v6 = vld [vmem:[#allocation5 + $0x18] sm:$0xff]  ;;  %vm267_vm1 = vcmask 261120   ;;  %v474_v9 = vld [vmem:[%s947_s2] ss:$0 sm:$0xff] }
  0x57   : > { %v502_v7 = vpack.c.bf16 %v259_v6, %v258_v4  ;;  %v255_v8 = vld [vmem:[%s224_s27] sm:$0xff]  ;;  %s479_s11 = sshll.u32 %s757_s22, 7  ;;  %s254_s12 = scalar_lea.vmem [#allocation7], %s471_s17 }
  0x58   : > { %500 = vmatpush3.bf16.msra.mxu0 %v499_v5  ;;  %v476_v21 = vld [vmem:[%s948_s3] ss:$0 sm:$0xff]  ;;  %s384_s10 = sshll.u32 %s254_s12, 4  ;;  %s901_s28 = scalar_lea.hbm %s950_s5, %s479_s11  ;;  %s903_s10 = int_to_ptr.vmem [resolvable:$true] %s384_s10 }
  0x59   : > { %501 = vmatprep.subr.bf16.mxu0 %v702_v0  ;;  %v477_v23 = vld [vmem:[%s949_s4] ss:$0 sm:$0xff]  ;;  %s371_s23 = scalar_lea.sflag [#allocation4], %s872_s16  ;;  %s626_s27 = scalar_lea.vmem %s903_s10, 128 }
  0x5a   : > { %p627_p4 = scmp.ne.s32.totalorder %s903_s10, %s626_s27  ;;  %s705_s22 = smov [#allocation7]  }
  0x5b   : > { %s630_s17 = sshll.u32 %s705_s22, 4  ;;  %s631_s17 = int_to_ptr.vmem [resolvable:$false] %s630_s17 }
  0x5c   : > { %503 = vmatpush3.bf16.msra.mxu0 %v502_v7  ;;  %p628_p6 = pnand %p627_p4, %p827_p12  ;;  %s632_s24 = scalar_lea.vmem %s631_s17, 256 }
  0x5d   : > { %p633_p10 = scmp.lt.s32.totalorder %s903_s10, %s631_s17  ;;  %p634_p13 = scmp.lt.s32.totalorder %s632_s24, %s626_s27 }
  0x5e   : > { %p629_p8 = pneg %p628_p6 }
  0x5f   : > { %496 = vmatmul.mubr.msk.f32.vlgmr.msra.gmra.mrb[0].mxu0 %vm267_vm1, %v255_v8  ;;  %p635_p3 = por %p634_p13, %p633_p10 }
  0x61   : > { %p636_p7 = pnand %p635_p3, %p629_p8 }
 0x132   : > { %v337_v10 = vpop.f32.mrb[0].mxu0 }
 0x133   : > { %v338_v11 = vadd.f32 %v474_v9, %v337_v10  ;;  %v497_v12 = vpop.f32.mrb[1].mxu0 }
 0x135   : > { %341 = vadd.xlane.f32.xlu0 %v338_v11 }
 0x1c2   : > { %v342_v13 = vpop.xlane.xlu0 %341 }
 0x1c3   : > { %v344_v14 = vmul.f32 0.0078125, %v342_v13 }
 0x1c5   : > { %v345_v15 = vsub.f32 %v338_v11, %v344_v14 }
 0x1c7   : > { %v346_v16 = vmul.f32 %v345_v15, %v345_v15 }
 0x1c9   : > { %347 = vadd.xlane.f32.xlu0 %v346_v16 }
 0x256   : > { %v348_v17 = vpop.xlane.xlu0 %347 }
 0x257   : > { %v349_v18 = vmul.f32 0.0078125, %v348_v17 }
 0x259   : > { %v350_v19 = vadd.f32 1e-05, %v349_v18 }
 0x25b   : > { %566 = vrsqrt.f32 %v350_v19 }
 0x265   : > { %v567_v20 = vpop.eup %566 }
 0x266   : > { %v352_v22 = vmul.f32 %v567_v20, %v345_v15 }
 0x268   : > { %v360_v24 = vmul.f32 %v476_v21, %v352_v22 }
 0x26a   : > { %v368_v25 = vadd.f32 %v477_v23, %v360_v24 }
 0x26c   : > { %369 = vst [vmem:[%s254_s12] sm:$0xff] %v368_v25 }
 0x26d   : > { %639 = shalt.err (!%p636_p7)
}
 0x26e   : > { %s640_s16 = scalar_lea.hbm %s901_s28, 128  ;;  %s644_s6 = scalar_lea.hbm %s950_s5, 256 }
 0x26f   : > { %p641_p9 = scmp.ne.s32.totalorder %s901_s28, %s640_s16  ;;  %p645_p0 = scmp.lt.u32.totalorder %s901_s28, %s950_s5 }
 0x270   : > { %p646_p11 = scmp.lt.u32.totalorder %s644_s6, %s640_s16  ;;  %p648_p4 = scmp.lt.u32.totalorder %s640_s16, %s901_s28 }
 0x271   : > { %p642_p2 = pnand %p641_p9, %p827_p12 }
 0x272   : > { %p647_p1 = por %p646_p11, %p645_p0 }
 0x273   : > { %p643_p5 = pneg %p642_p2 }
 0x274   : > { %p649_p6 = por %p648_p4, %p647_p1 }
 0x276   : > { %p650_p8 = pnand %p649_p6, %p643_p5 }
 0x278   : > { %653 = shalt.err (!%p650_p8)
}
 0x279   : > { %510 = dma.vmem_to_hbm [thread:$0]  (%p827_p12), %s903_s10, 128, %s901_s28, %s371_s23  }
 0x27a PF: > { %s396_s11 = sand.u32 1, %s684_s18   ;;  %p965_p10 = scmp.ne.s32.totalorder %s955_s25, 0 }
 0x27b   : > { %p966_p13 = scmp.ge.s32.totalorder %s696_s21, 2  ;;  %s397_s12 = scalar_lea.sflag [#allocation4], %s396_s11 }
 0x27d   : > { %p521_p3 = pnand %p966_p13, %p965_p10 }
 0x27f   : > { %679 = dma.done.wait (!%p521_p3), %s397_s12, 128  }
 0x280   : > { %681 = vsyncadd (!%p521_p3), %s397_s12, 4294967168  ;;  %p19_p7 = scmp.ge.s32.totalorder %s792_s30, 4   ;;  %s967_s18 = smov %s688_s19 }
 0x281   : > { %s968_s19 = smov %s692_s20  ;;  %s969_s20 = smov %s823_s8 }
 0x282   : > { %s970_s21 = smov %s792_s30  ;;  %21 = sbr.rel (!%p19_p7) target bundleno = 6 (0x6), region = 89 }
 0x289   :  { %402 = vsyncpa [#allocation3], 1 }
 0x28a   :  { %404 = vsyncpa [#allocation3 + $0x1], 1 }
 0x28b   :  { %405 = vsyncpa [#allocation6], 1 }
 0x28c   :  { %406 = vsyncpa [#allocation4], 1 }
 0x28d   :  { %408 = vsyncpa [#allocation4 + $0x1], 1 }

</bundles_post_ra>
